<compile_context>
chip_gen: v5e
topology: v5e:2x2
jax: 0.10.0
libtpu: 0.0.40
codegen_flags: <defaults>
</compile_context>

<pallas_src>
import numpy as np
import jax
import jax.numpy as jnp
from jax.experimental import pallas as pl
from jax.experimental.pallas import tpu as pltpu


def _round_up(x, m):
    return (x + m - 1) // m * m


def _dice_sums_kernel(yp_ref, yt_ref, prod_ref, plus_ref):
    """Accumulate sum(yt*yp) and sum(yt+yp) over the spatial grid axis."""
    k = pl.program_id(1)

    @pl.when(k == 0)
    def _():
        prod_ref[...] = jnp.zeros_like(prod_ref)
        plus_ref[...] = jnp.zeros_like(plus_ref)

    yp = yp_ref[...].astype(jnp.float32)   # cast in-kernel; DMA stays narrow
    yt = yt_ref[...].astype(jnp.float32)
    prod_ref[...] += jnp.sum(yt * yp, axis=-1, keepdims=True)
    plus_ref[...] += jnp.sum(yt + yp, axis=-1, keepdims=True)


def _dice_sums(y_pred, y_true, *, max_block_bytes=4 * 1024 * 1024):
    """Per-(batch, class) spatial sums via Pallas; returns (prod, plus), each (B, C) f32."""
    B, C, H, W = y_pred.shape
    R, HW = B * C, H * W

    yp = y_pred.reshape(R, HW)
    yt = y_true.reshape(R, HW)

    # Row tiling: pad rows to a multiple of 8 sublanes; use 2 parallel row
    # blocks (v7x megacore) whenever the padded row count permits it.
    rows_padded = _round_up(R, 8)
    if rows_padded >= 16 and rows_padded % 16 == 0:
        row_tile = rows_padded // 2
    else:
        row_tile = rows_padded
    eb = max(yp.dtype.itemsize, yt.dtype.itemsize)
    while row_tile % 16 == 0 and row_tile * 512 * eb > max_block_bytes:
        row_tile //= 2

    # Spatial tiling: biggest tile within the per-block VMEM budget, multiple
    # of 512 lanes; zero-pad H*W up to a tile multiple (exact for both sums).
    t_cap = max(512, (max_block_bytes // (row_tile * eb)) // 512 * 512)
    if HW <= t_cap:
        spatial_tile = _round_up(HW, 128)
        hw_padded = spatial_tile
    else:
        spatial_tile = t_cap
        hw_padded = _round_up(HW, spatial_tile)

    pad_r, pad_c = rows_padded - R, hw_padded - HW
    if pad_r or pad_c:
        yp = jnp.pad(yp, ((0, pad_r), (0, pad_c)))
        yt = jnp.pad(yt, ((0, pad_r), (0, pad_c)))

    grid = (rows_padded // row_tile, hw_padded // spatial_tile)

    prod, plus = pl.pallas_call(
        _dice_sums_kernel,
        out_shape=(jax.ShapeDtypeStruct((rows_padded, 1), jnp.float32),
                   jax.ShapeDtypeStruct((rows_padded, 1), jnp.float32)),
        grid_spec=pltpu.PrefetchScalarGridSpec(
            num_scalar_prefetch=0,
            grid=grid,
            in_specs=[
                pl.BlockSpec((row_tile, spatial_tile), lambda r, k: (r, k)),
                pl.BlockSpec((row_tile, spatial_tile), lambda r, k: (r, k)),
            ],
            out_specs=[
                pl.BlockSpec((row_tile, 1), lambda r, k: (r, 0)),
                pl.BlockSpec((row_tile, 1), lambda r, k: (r, 0)),
            ],
        ),
        compiler_params=pltpu.CompilerParams(
            dimension_semantics=("parallel", "arbitrary"),
            vmem_limit_bytes=32 * 1024 * 1024),
    )(yp, yt)

    return prod[:R, 0].reshape(B, C), plus[:R, 0].reshape(B, C)


def soft_dice_loss(y_pred, y_true, *, weight=None, ignore_index=(),
                   reduction='mean', mode='dice', eps=0.0,
                   use_positive=False, max_block_bytes=4 * 1024 * 1024):
    """Pallas implementation of SoftDiceLoss.forward for NCHW inputs."""
    # TODO(synk): only axis=1 (NCHW class axis) is supported; a generic `axis`
    # would need a different flatten/transpose in the wrapper.
    assert y_pred.shape == y_true.shape and y_pred.ndim == 4, "expects NCHW input"
    assert mode in ('iou', 'dice')
    assert reduction in ('none', 'mean', 'sum')
    B, C = y_pred.shape[:2]
    factor = {'iou': -1.0, 'dice': 0.0}[mode]

    prod, plus = _dice_sums(y_pred, y_true, max_block_bytes=max_block_bytes)

    # Tiny (B, C) epilogue in plain JAX: IoU/dice, class weights, reduction.
    iou = (2.0 + factor) * prod / (plus + factor * prod + eps)

    keep = np.ones(C, dtype=bool)
    if len(ignore_index):
        keep[np.asarray(list(ignore_index))] = False
    keep_idx = np.nonzero(keep)[0]

    w = (jnp.ones((C,), jnp.float32) if weight is None
         else jnp.asarray(weight, jnp.float32).reshape(C))

    iou_k = iou[:, keep_idx]                    # (B, Ck)
    w_k = w[keep_idx]                           # (Ck,)
    notnan = jnp.logical_not(jnp.isnan(iou_k))
    w_eff = notnan.astype(jnp.float32) * w_k    # (B, Ck)
    # _apply_weight "ignore nan": zero the NaN entries so an all-empty class
    # (prod=plus=0 -> NaN iou) cannot poison the sum.  (The literal PyTorch
    # expression x*weight keeps NaN since NaN*0==NaN; we follow the documented
    # intent of ignoring NaN classes.)
    x = jnp.where(notnan, iou_k, 0.0) * w_eff / jnp.sum(w_eff, -1, keepdims=True)
    per_sample = jnp.sum(x, axis=-1)            # (B,)

    if reduction == 'none':
        res = -per_sample
    elif reduction == 'mean':
        res = -jnp.mean(per_sample)
    else:
        res = -jnp.sum(per_sample)
    return res + 1.0 if use_positive else res


def _reference_soft_dice(y_pred, y_true, *, weight=None, ignore_index=(),
                         reduction='mean', mode='dice', eps=0.0,
                         use_positive=False):
    """Pure-JAX replica of SoftDiceLoss.forward (f32 math)."""
    y_pred = y_pred.astype(jnp.float32)
    y_true = y_true.astype(jnp.float32)
    C = y_pred.shape[1]
    factor = {'iou': -1.0, 'dice': 0.0}[mode]
    prod = (y_true * y_pred).sum(axis=(2, 3))
    plus = (y_true + y_pred).sum(axis=(2, 3))
    iou = (2.0 + factor) * prod / (plus + factor * prod + eps)
    keep = np.ones(C, dtype=bool)
    if len(ignore_index):
        keep[np.asarray(list(ignore_index))] = False
    idx = np.nonzero(keep)[0]
    w = (jnp.ones((C,), jnp.float32) if weight is None
         else jnp.asarray(weight, jnp.float32).reshape(C))
    x, w = iou[:, idx], w[idx]
    nn = jnp.logical_not(jnp.isnan(x))
    w_eff = nn.astype(jnp.float32) * w
    x = jnp.where(nn, x, 0.0) * w_eff / jnp.sum(w_eff, -1, keepdims=True)
    per_sample = jnp.sum(x, axis=-1)
    if reduction == 'none':
        res = -per_sample
    elif reduction == 'mean':
        res = -jnp.mean(per_sample)
    else:
        res = -jnp.sum(per_sample)
    return res + 1.0 if use_positive else res


if __name__ == "__main__":
    key = jax.random.PRNGKey(0)
    k1, k2, k3, k4 = jax.random.split(key, 4)

    # Check 1: small f32 NCHW input, defaults (dice, mean, no weight).
    B, C, H, W = 2, 4, 16, 16
    y_pred = jax.nn.sigmoid(jax.random.normal(k1, (B, C, H, W), jnp.float32))
    y_true = (jax.random.uniform(k2, (B, C, H, W)) > 0.5).astype(jnp.float32)
    out = jax.block_until_ready(soft_dice_loss(y_pred, y_true))
    ref = jax.block_until_ready(_reference_soft_dice(y_pred, y_true))
    np.testing.assert_allclose(np.asarray(out), np.asarray(ref),
                               rtol=1e-5, atol=1e-6)

    # Check 2: bf16 inputs (no wrapper upcast), non-multiple H*W (exercises the
    # zero-pad path), small VMEM budget forcing a multi-step spatial grid,
    # class weights + ignore_index + reduction='none' + use_positive.
    B2, C2, H2, W2 = 2, 4, 60, 84          # H*W = 5040 -> padded to 5120
    yp2 = jax.nn.sigmoid(jax.random.normal(k3, (B2, C2, H2, W2))).astype(jnp.bfloat16)
    yt2 = (jax.random.uniform(k4, (B2, C2, H2, W2)) > 0.5).astype(jnp.bfloat16)
    wgt = [1.0, 2.0, 0.5, 1.5]
    out2 = jax.block_until_ready(
        soft_dice_loss(yp2, yt2, weight=wgt, ignore_index=(2,),
                       reduction='none', use_positive=True,
                       max_block_bytes=16 * 1024))
    ref2 = jax.block_until_ready(
        _reference_soft_dice(yp2, yt2, weight=wgt, ignore_index=(2,),
                             reduction='none', use_positive=True))
    np.testing.assert_allclose(np.asarray(out2), np.asarray(ref2),
                               rtol=1e-4, atol=1e-5)

    print("KERNEL_OK")
</pallas_src>

<mosaic_0001>
module attributes {stable_mosaic.version = 11 : i64} {
  func.func @_dice_sums_kernel(%arg0: i32, %arg1: i32, %arg2: memref<8x256xf32, #tpu.memory_space<vmem>>, %arg3: memref<8x256xf32, #tpu.memory_space<vmem>>, %arg4: memref<8x1xf32, #tpu.memory_space<vmem>>, %arg5: memref<8x1xf32, #tpu.memory_space<vmem>>) attributes {dimension_semantics = [#tpu.dimension_semantics<parallel>, #tpu.dimension_semantics<arbitrary>], iteration_bounds = array<i64: 1, 1>, scalar_prefetch = 0 : i64, scratch_operands = 0 : i64, tpu.core_type = #tpu.core_type<tc>, window_params = [{transform_indices = @transform_0, window_bounds = array<i64: 8, 256>}, {transform_indices = @transform_1, window_bounds = array<i64: 8, 256>}, {transform_indices = @transform_2, window_bounds = array<i64: 8, 1>}, {transform_indices = @transform_3, window_bounds = array<i64: 8, 1>}]} {
    %c0_i32 = arith.constant 0 : i32
    %0 = arith.cmpi eq, %arg1, %c0_i32 : i32
    %1 = arith.extui %0 : i1 to i32
    %c0_i32_0 = arith.constant 0 : i32
    %2 = arith.cmpi ne, %1, %c0_i32_0 : i32
    scf.if %2 {
      %cst_13 = arith.constant 0.000000e+00 : f32
      %17 = vector.broadcast %cst_13 : f32 to vector<8x1xf32>
      %c0_14 = arith.constant 0 : index
      %c0_15 = arith.constant 0 : index
      %18 = vector.load %arg4[%c0_14, %c0_15] : memref<8x1xf32, #tpu.memory_space<vmem>>, vector<8x1xf32>
      tpu.vector_store %arg4[%c0_14, %c0_15], %17 {strides = array<i32>} : memref<8x1xf32, #tpu.memory_space<vmem>>, vector<8x1xf32>,
      %cst_16 = arith.constant 0.000000e+00 : f32
      %19 = vector.broadcast %cst_16 : f32 to vector<8x1xf32>
      %c0_17 = arith.constant 0 : index
      %c0_18 = arith.constant 0 : index
      %20 = vector.load %arg5[%c0_17, %c0_18] : memref<8x1xf32, #tpu.memory_space<vmem>>, vector<8x1xf32>
      tpu.vector_store %arg5[%c0_17, %c0_18], %19 {strides = array<i32>} : memref<8x1xf32, #tpu.memory_space<vmem>>, vector<8x1xf32>,
    } else {
    }
    %c0 = arith.constant 0 : index
    %c0_1 = arith.constant 0 : index
    %3 = vector.load %arg2[%c0, %c0_1] : memref<8x256xf32, #tpu.memory_space<vmem>>, vector<8x256xf32>
    %c0_2 = arith.constant 0 : index
    %c0_3 = arith.constant 0 : index
    %4 = vector.load %arg3[%c0_2, %c0_3] : memref<8x256xf32, #tpu.memory_space<vmem>>, vector<8x256xf32>
    %c0_4 = arith.constant 0 : index
    %c0_5 = arith.constant 0 : index
    %5 = vector.load %arg4[%c0_4, %c0_5] : memref<8x1xf32, #tpu.memory_space<vmem>>, vector<8x1xf32>
    %6 = arith.mulf %4, %3 : vector<8x256xf32>
    %cst = arith.constant dense<0.000000e+00> : vector<8xf32>
    %7 = vector.multi_reduction <add>, %6, %cst [1] : vector<8x256xf32> to vector<8xf32>
    %8 = vector.shape_cast %7 : vector<8xf32> to vector<8x1xf32>
    %9 = arith.addf %5, %8 : vector<8x1xf32>
    %c0_6 = arith.constant 0 : index
    %c0_7 = arith.constant 0 : index
    %10 = vector.load %arg4[%c0_6, %c0_7] : memref<8x1xf32, #tpu.memory_space<vmem>>, vector<8x1xf32>
    tpu.vector_store %arg4[%c0_6, %c0_7], %9 {strides = array<i32>} : memref<8x1xf32, #tpu.memory_space<vmem>>, vector<8x1xf32>,
    %c0_8 = arith.constant 0 : index
    %c0_9 = arith.constant 0 : index
    %11 = vector.load %arg5[%c0_8, %c0_9] : memref<8x1xf32, #tpu.memory_space<vmem>>, vector<8x1xf32>
    %12 = arith.addf %4, %3 : vector<8x256xf32>
    %cst_10 = arith.constant dense<0.000000e+00> : vector<8xf32>
    %13 = vector.multi_reduction <add>, %12, %cst_10 [1] : vector<8x256xf32> to vector<8xf32>
    %14 = vector.shape_cast %13 : vector<8xf32> to vector<8x1xf32>
    %15 = arith.addf %11, %14 : vector<8x1xf32>
    %c0_11 = arith.constant 0 : index
    %c0_12 = arith.constant 0 : index
    %16 = vector.load %arg5[%c0_11, %c0_12] : memref<8x1xf32, #tpu.memory_space<vmem>>, vector<8x1xf32>
    tpu.vector_store %arg5[%c0_11, %c0_12], %15 {strides = array<i32>} : memref<8x1xf32, #tpu.memory_space<vmem>>, vector<8x1xf32>,
    return
  }
  func.func @transform_0(%arg0: i32, %arg1: i32) -> (i32, i32) {
    %c0_i32 = arith.constant 0 : i32
    return %arg0, %arg1 : i32, i32
  }
  func.func @transform_1(%arg0: i32, %arg1: i32) -> (i32, i32) {
    %c0_i32 = arith.constant 0 : i32
    return %arg0, %arg1 : i32, i32
  }
  func.func @transform_2(%arg0: i32, %arg1: i32) -> (i32, i32) {
    %c0_i32 = arith.constant 0 : i32
    %c0_i32_0 = arith.constant 0 : i32
    return %arg0, %c0_i32 : i32, i32
  }
  func.func @transform_3(%arg0: i32, %arg1: i32) -> (i32, i32) {
    %c0_i32 = arith.constant 0 : i32
    %c0_i32_0 = arith.constant 0 : i32
    return %arg0, %c0_i32 : i32, i32
  }
}

</mosaic_0001>

<bundles_post_ra>
// kernel: tpu_custom_call.1
= control target key start
LH: loop header
LB: loop body
LE: loop exit
PB: predicated region body
PF: predicated region fallthrough
CT: control target
= control target key end

     0   :  { %9 = vsyncpa [#allocation3], 0  ;;  %s185_s0 = inlined_call_operand.hbm [shape: f32[8,256], index: 0, kind: input, shape index: {}]   ;;  %s186_s1 = inlined_call_operand.hbm [shape: f32[8,256], index: 1, kind: input, shape index: {}]   ;;  %s187_s2 = inlined_call_operand.vmem [shape: f32[8,1], index: 2, kind: output, shape index: {0}]   ;;  %s188_s3 = inlined_call_operand.vmem [shape: f32[8,1], index: 3, kind: output, shape index: {1}]  }
   0x1   :  { %s16_s14 = sshll.u32 %s185_s0, 4  ;;  %s17_s14 = int_to_ptr.hbm [resolvable:$true] %s16_s14 }
   0x2   :  { %10 = vsyncpa [#allocation5], 0  ;;  %s134_s15 = smov [#allocation2]   ;;  %s27_s19 = sshll.u32 %s186_s1, 4  ;;  %s28_s19 = int_to_ptr.hbm [resolvable:$true] %s27_s19 }
   0x3   :  { %s18_s16 = sshll.u32 %s134_s15, 4  ;;  %s135_s20 = smov [#allocation4]   ;;  %s19_s16 = int_to_ptr.vmem [resolvable:$true] %s18_s16 }
   0x4   :  { %21 = dma.hbm_to_vmem [thread:$0]  %s17_s14, 256, %s19_s16, [#allocation3]  }
   0x5   :  { %s29_s21 = sshll.u32 %s135_s20, 4  ;;  %s30_s21 = int_to_ptr.vmem [resolvable:$true] %s29_s21 }
   0x6   :  { %32 = dma.hbm_to_vmem [thread:$0]  %s28_s19, 256, %s30_s21, [#allocation5]  }
   0x7   :  { %130 = dma.done.wait [#allocation3], 256  }
   0x8   :  { %131 = vsyncadd [#allocation3], 4294967040 }
   0x9   :  { %132 = dma.done.wait [#allocation5], 256  }
   0xa   :  { %133 = vsyncadd [#allocation5], 4294967040  ;;  %vm45_vm0 = vcmask 7168   ;;  %v136_v0 = vmov 0.0   ;;  %v48_v1 = vld [vmem:[#allocation2] sm:$0xff]  ;;  %v49_v2 = vld [vmem:[#allocation2 + $0x8] sm:$0xff] }
   0xb   :  { %46 = vst.msk [vmem:[%s187_s2] sm:$0xff] %vm45_vm0, %v136_v0  ;;  %v50_v3 = vld [vmem:[#allocation4] sm:$0xff]  ;;  %v51_v4 = vld [vmem:[#allocation4 + $0x8] sm:$0xff] }
   0xc   :  { %47 = vst.msk [vmem:[%s188_s3] sm:$0xff] %vm45_vm0, %v136_v0  ;;  %v53_v5 = vmul.f32 %v50_v3, %v48_v1  ;;  %v54_v6 = vmul.f32 %v51_v4, %v49_v2  ;;  %v62_v8 = vadd.f32 %v50_v3, %v48_v1  ;;  %v63_v9 = vadd.f32 %v51_v4, %v49_v2 }
   0xe   :  { %v55_v7 = vadd.f32 %v54_v6, %v53_v5  ;;  %v64_v10 = vadd.f32 %v63_v9, %v62_v8 }
  0x10   :  { %56 = vadd.xlane.f32.xlu0 %v55_v7 }
  0x12   :  { %v52_v11 = vld [vmem:[%s187_s2] sm:$0xff] }
  0x13   :  { %v61_v14 = vld [vmem:[%s188_s3] sm:$0xff] }
  0x18   :  { %65 = vadd.xlane.f32.xlu0 %v64_v10 }
  0x83   :  { %v57_v12 = vpop.xlane.xlu0 %56 }
  0x84   :  { %v58_v13 = vadd.f32 %v57_v12, %v52_v11 }
  0x86   :  { %60 = vst.msk [vmem:[%s187_s2] sm:$0xff] %vm45_vm0, %v58_v13 }
  0x8b   :  { %v66_v15 = vpop.xlane.xlu0 %65 }
  0x8c   :  { %v67_v16 = vadd.f32 %v66_v15, %v61_v14 }
  0x8e   :  { %68 = vst.msk [vmem:[%s188_s3] sm:$0xff] %vm45_vm0, %v67_v16 }
  0x8f   :  { %77 = vsyncpa [#allocation3], 1 }
  0x90   :  { %78 = vsyncpa [#allocation5], 1 }

</bundles_post_ra>
